<compile_context>
chip_gen: v6e
topology: v6e:2x2x1
jax: 0.10.0
libtpu: 0.0.40
codegen_flags: <defaults>
</compile_context>

<pallas_src>
import numpy as np
import jax
import jax.numpy as jnp
from jax.experimental import pallas as pl
from jax.experimental.pallas import tpu as pltpu


def skip_ffn_kernel(x_ref, w1_ref, b1_ref, dwk_ref, cb_ref, g_ref, be_ref,
                    w2_ref, b2_ref, o_ref):
    # x_ref : ((H+2)*W, c1)  one batch element, zero-row-padded in H, rows flattened
    # o_ref : (TH, W, c1)    one row-tile of the output
    TH, W, c1 = o_ref.shape
    c2 = w1_ref.shape[1]

    th = pl.program_id(1)
    n_th = pl.num_programs(1)

    # ---------- fc1 on TH + 2 rows (tile + 1-row halo on each side) ----------
    start = th * (TH * W)
    if (TH * W) % 8 == 0:
        start = pl.multiple_of(start, 8)
    x_ext = x_ref[pl.ds(start, (TH + 2) * W), :].astype(jnp.bfloat16)
    y = jnp.dot(x_ext, w1_ref[...], preferred_element_type=jnp.float32)
    y = y + b1_ref[...]
    y_ext = y.reshape(TH + 2, W, c2)            # leading-dim split only

    # Zero the halo rows that fall outside the image (= conv zero padding).
    # The wrapper pads x with zero rows, but fc1(0) == b1, so mask after fc1.
    ri = jax.lax.broadcasted_iota(jnp.int32, (TH + 2, 1, 1), 0)
    row_ok = jnp.logical_and(jnp.logical_or(ri > 0, th > 0),
                             jnp.logical_or(ri < TH + 1, th < n_th - 1))
    y_ext = jnp.where(row_ok, y_ext, 0.0)

    # ---------- depthwise 3x3 conv, register-resident (XLU rolls + masks) ----------
    wi = jax.lax.broadcasted_iota(jnp.int32, (1, W, 1), 1)
    y_wm = jnp.where(wi > 0, pltpu.roll(y_ext, shift=1, axis=1), 0.0)          # value at w-1
    y_wp = jnp.where(wi < W - 1, pltpu.roll(y_ext, shift=W - 1, axis=1), 0.0)  # value at w+1
    shifted = (y_wm, y_ext, y_wp)               # kb = 0,1,2  <->  w-1, w, w+1

    taps = dwk_ref[...]                         # (9, c2) loaded once, sliced below
    conv = jnp.zeros((TH, W, c2), jnp.float32)
    for ka in range(3):
        for kb in range(3):
            # output row r uses y_ext row (r + ka), i.e. image row r + ka - 1
            conv = conv + shifted[kb][ka:ka + TH] * taps[3 * ka + kb]

    # ---------- conv bias + skip + LayerNorm(c2) + exact (erf) GELU, all f32 ----------
    z = conv + cb_ref[...] + y_ext[1:TH + 1]
    mu = jnp.mean(z, axis=-1, keepdims=True)
    d = z - mu
    var = jnp.mean(d * d, axis=-1, keepdims=True)
    zn = d * jax.lax.rsqrt(var + 1e-5)
    zn = zn * g_ref[...] + be_ref[...]
    act = 0.5 * zn * (1.0 + jax.lax.erf(zn * 0.7071067811865475))

    # ---------- fc2 (bf16 MXU operands, f32 accumulation) ----------
    out = jnp.dot(act.reshape(TH * W, c2).astype(jnp.bfloat16), w2_ref[...],
                  preferred_element_type=jnp.float32) + b2_ref[...]
    o_ref[...] = out.reshape(TH, W, c1).astype(o_ref.dtype)


def _pick_tile_h(H, W, c2):
    """Largest row tile TH that divides H, is a multiple of 8, is <= 64 rows and
    keeps one f32 (TH+2, W, c2) activation slab under ~1 MiB; falls back to the
    full height when H is not 8-divisible (block then equals the full dim)."""
    if H % 8 != 0:
        return H
    th = 8
    for t in range(16, min(H, 64) + 1, 8):
        if H % t == 0 and (t + 2) * W * c2 * 4 <= (1 << 20):
            th = t
    return th


def skip_ffn(x, params):
    """x: (B, H, W, c1) float32 -> (B, H, W, c1), matching the PyTorch forward."""
    B, H, W, c1 = x.shape
    w1, b1, dwk, cb, gamma, beta, w2, b2 = (
        params["w1"], params["b1"], params["dwk"], params["cb"],
        params["gamma"], params["beta"], params["w2"], params["b2"])
    c2 = w1.shape[1]

    TH = _pick_tile_h(H, W, c2)
    n_th = H // TH

    # Zero-pad one row above/below (H-halo source for the conv) and flatten the
    # padded rows so the kernel can slice (TH+2)*W matmul-ready rows directly.
    x_pad = jnp.pad(x, ((0, 0), (1, 1), (0, 0), (0, 0))).reshape(B, (H + 2) * W, c1)

    # bf16 weights for the MXU; accumulation stays f32 inside the kernel.
    w1b = w1.astype(jnp.bfloat16)
    w2b = w2.astype(jnp.bfloat16)

    const = lambda b, t: (0, 0)                  # grid-invariant params
    grid_spec = pltpu.PrefetchScalarGridSpec(
        num_scalar_prefetch=0,
        grid=(B, n_th),
        in_specs=[
            pl.BlockSpec((pl.Squeezed(), (H + 2) * W, c1), lambda b, t: (b, 0, 0)),
            pl.BlockSpec((c1, c2), const),       # fc1 weight (bf16)
            pl.BlockSpec((1, c2), const),        # fc1 bias
            pl.BlockSpec((9, c2), const),        # depthwise conv taps
            pl.BlockSpec((1, c2), const),        # depthwise conv bias
            pl.BlockSpec((1, c2), const),        # LN gamma
            pl.BlockSpec((1, c2), const),        # LN beta
            pl.BlockSpec((c2, c1), const),       # fc2 weight (bf16)
            pl.BlockSpec((1, c1), const),        # fc2 bias
        ],
        out_specs=pl.BlockSpec((pl.Squeezed(), TH, W, c1),
                               lambda b, t: (b, t, 0, 0)),
    )

    return pl.pallas_call(
        skip_ffn_kernel,
        out_shape=jax.ShapeDtypeStruct((B, H, W, c1), x.dtype),
        grid_spec=grid_spec,
        compiler_params=pltpu.CompilerParams(
            dimension_semantics=("parallel", "parallel"),
            vmem_limit_bytes=32 * 1024 * 1024),
    )(x_pad, w1b, b1, dwk, cb, gamma, beta, w2b, b2)


def skip_ffn_ref(x, params):
    """Pure-JAX f32 reference mirroring the PyTorch forward."""
    w1, b1, dwk, cb, gamma, beta, w2, b2 = (
        params["w1"], params["b1"], params["dwk"], params["cb"],
        params["gamma"], params["beta"], params["w2"], params["b2"])
    B, H, W, _ = x.shape
    y = x @ w1 + b1[0]
    yp = jnp.pad(y, ((0, 0), (1, 1), (1, 1), (0, 0)))
    conv = jnp.zeros_like(y)
    for dh in range(3):
        for dw in range(3):
            conv = conv + yp[:, dh:dh + H, dw:dw + W, :] * dwk[dh * 3 + dw][None, None, None, :]
    conv = conv + cb[0]
    z = conv + y
    mu = z.mean(-1, keepdims=True)
    var = ((z - mu) ** 2).mean(-1, keepdims=True)
    zn = (z - mu) * jax.lax.rsqrt(var + 1e-5) * gamma[0] + beta[0]
    a = 0.5 * zn * (1.0 + jax.lax.erf(zn / jnp.sqrt(2.0)))
    return a @ w2 + b2[0]


def init_params(key, c1, c2):
    ks = jax.random.split(key, 8)
    return {
        "w1":    jax.random.normal(ks[0], (c1, c2), jnp.float32) * 0.1,
        "b1":    jax.random.normal(ks[1], (1, c2), jnp.float32) * 0.01,
        "dwk":   jax.random.normal(ks[2], (9, c2), jnp.float32) * 0.1,   # (kh*kw, C)
        "cb":    jax.random.normal(ks[3], (1, c2), jnp.float32) * 0.01,  # conv bias
        "gamma": 1.0 + jax.random.normal(ks[4], (1, c2), jnp.float32) * 0.01,
        "beta":  jax.random.normal(ks[5], (1, c2), jnp.float32) * 0.01,
        "w2":    jax.random.normal(ks[6], (c2, c1), jnp.float32) * 0.1,
        "b2":    jax.random.normal(ks[7], (1, c1), jnp.float32) * 0.01,
    }


if __name__ == "__main__":
    B, H, W, c1, c2 = 2, 8, 8, 4, 32

    key = jax.random.PRNGKey(0)
    kx, kp = jax.random.split(key)
    x = jax.random.normal(kx, (B, H, W, c1), jnp.float32)
    params = init_params(kp, c1, c2)

    out = jax.block_until_ready(skip_ffn(x, params))
    ref = skip_ffn_ref(x, params)

    assert out.shape == (B, H, W, c1)
    # bf16 MXU operands vs. pure-f32 reference -> modest tolerance.
    np.testing.assert_allclose(np.asarray(out), np.asarray(ref), atol=3e-2, rtol=3e-2)

    print("KERNEL_OK")
</pallas_src>

<mosaic_0001>
module attributes {stable_mosaic.version = 11 : i64} {
  func.func @skip_ffn_kernel(%arg0: i32, %arg1: i32, %arg2: memref<1x80x4xf32, #tpu.memory_space<vmem>>, %arg3: memref<4x32xbf16, #tpu.memory_space<vmem>>, %arg4: memref<1x32xf32, #tpu.memory_space<vmem>>, %arg5: memref<9x32xf32, #tpu.memory_space<vmem>>, %arg6: memref<1x32xf32, #tpu.memory_space<vmem>>, %arg7: memref<1x32xf32, #tpu.memory_space<vmem>>, %arg8: memref<1x32xf32, #tpu.memory_space<vmem>>, %arg9: memref<32x4xbf16, #tpu.memory_space<vmem>>, %arg10: memref<1x4xf32, #tpu.memory_space<vmem>>, %arg11: memref<1x8x8x4xf32, #tpu.memory_space<vmem>>) attributes {dimension_semantics = [#tpu.dimension_semantics<parallel>, #tpu.dimension_semantics<parallel>], iteration_bounds = array<i64: 2, 1>, scalar_prefetch = 0 : i64, scratch_operands = 0 : i64, tpu.core_type = #tpu.core_type<tc>, window_params = [{transform_indices = @transform_0, window_bounds = array<i64: 1, 80, 4>}, {pipeline_mode = #tpu.pipeline_mode<synchronous>, transform_indices = @transform_1, window_bounds = array<i64: 4, 32>}, {pipeline_mode = #tpu.pipeline_mode<synchronous>, transform_indices = @transform_2, window_bounds = array<i64: 1, 32>}, {pipeline_mode = #tpu.pipeline_mode<synchronous>, transform_indices = @transform_3, window_bounds = array<i64: 9, 32>}, {pipeline_mode = #tpu.pipeline_mode<synchronous>, transform_indices = @transform_4, window_bounds = array<i64: 1, 32>}, {pipeline_mode = #tpu.pipeline_mode<synchronous>, transform_indices = @transform_5, window_bounds = array<i64: 1, 32>}, {pipeline_mode = #tpu.pipeline_mode<synchronous>, transform_indices = @transform_6, window_bounds = array<i64: 1, 32>}, {pipeline_mode = #tpu.pipeline_mode<synchronous>, transform_indices = @transform_7, window_bounds = array<i64: 32, 4>}, {pipeline_mode = #tpu.pipeline_mode<synchronous>, transform_indices = @transform_8, window_bounds = array<i64: 1, 4>}, {transform_indices = @transform_9, window_bounds = array<i64: 1, 8, 8, 4>}]} {
    %c64_i32 = arith.constant 64 : i32
    %0 = arith.muli %arg1, %c64_i32 : i32
    %1 = tpu.assume_multiple %0, 8 : i32
    %c0 = arith.constant 0 : index
    %2 = arith.index_cast %1 : i32 to index
    %c0_0 = arith.constant 0 : index
    %3 = vector.load %arg2[%c0, %2, %c0_0] : memref<1x80x4xf32, #tpu.memory_space<vmem>>, vector<1x80x4xf32>
    %4 = vector.shape_cast %3 : vector<1x80x4xf32> to vector<80x4xf32>
    %5 = arith.truncf %4 : vector<80x4xf32> to vector<80x4xbf16>
    %c0_1 = arith.constant 0 : index
    %c0_2 = arith.constant 0 : index
    %6 = vector.load %arg3[%c0_1, %c0_2] : memref<4x32xbf16, #tpu.memory_space<vmem>>, vector<4x32xbf16>
    %cst = arith.constant dense<0.000000e+00> : vector<80x32xf32>
    %7 = tpu.matmul %5, %6, %cst {dimension_numbers = #tpu.dot_dimension_numbers<[1], [0], [0], [1], [0, 0, 1, 1], [], []>} : vector<80x4xbf16>, vector<4x32xbf16>, vector<80x32xf32> -> vector<80x32xf32>
    %c0_3 = arith.constant 0 : index
    %c0_4 = arith.constant 0 : index
    %8 = vector.load %arg4[%c0_3, %c0_4] : memref<1x32xf32, #tpu.memory_space<vmem>>, vector<1x32xf32>
    %9 = vector.broadcast %8 : vector<1x32xf32> to vector<80x32xf32>
    %10 = arith.addf %7, %9 : vector<80x32xf32>
    %11 = vector.shape_cast %10 : vector<80x32xf32> to vector<10x8x32xf32>
    %12 = tpu.iota {dimensions = array<i32: 0>} : vector<10x1x1xi32>
    %c0_i32 = arith.constant 0 : i32
    %13 = vector.broadcast %c0_i32 : i32 to vector<10x1x1xi32>
    %14 = arith.cmpi sgt, %12, %13 : vector<10x1x1xi32>
    %c0_i32_5 = arith.constant 0 : i32
    %15 = arith.cmpi sgt, %arg1, %c0_i32_5 : i32
    %16 = vector.broadcast %15 : i1 to vector<10x1x1xi1>
    %17 = arith.ori %14, %16 : vector<10x1x1xi1>
    %c9_i32 = arith.constant 9 : i32
    %18 = vector.broadcast %c9_i32 : i32 to vector<10x1x1xi32>
    %19 = arith.cmpi slt, %12, %18 : vector<10x1x1xi32>
    %c0_i32_6 = arith.constant 0 : i32
    %20 = arith.cmpi slt, %arg1, %c0_i32_6 : i32
    %21 = vector.broadcast %20 : i1 to vector<10x1x1xi1>
    %22 = arith.ori %19, %21 : vector<10x1x1xi1>
    %23 = arith.andi %17, %22 : vector<10x1x1xi1>
    %cst_7 = arith.constant 0.000000e+00 : f32
    %24 = vector.shape_cast %23 : vector<10x1x1xi1> to vector<10x1x1xi1>
    %25 = vector.broadcast %24 : vector<10x1x1xi1> to vector<10x8x32xi1>
    %26 = vector.broadcast %cst_7 : f32 to vector<10x8x32xf32>
    %27 = arith.select %25, %11, %26 : vector<10x8x32xi1>, vector<10x8x32xf32>
    %28 = tpu.iota {dimensions = array<i32: 1>} : vector<1x8x1xi32>
    %c0_i32_8 = arith.constant 0 : i32
    %29 = vector.broadcast %c0_i32_8 : i32 to vector<1x8x1xi32>
    %30 = arith.cmpi sgt, %28, %29 : vector<1x8x1xi32>
    %c1_i32 = arith.constant 1 : i32
    %31 = tpu.dynamic_rotate %27 by %c1_i32 dim 1 : vector<10x8x32xf32>, i32 -> vector<10x8x32xf32>
    %cst_9 = arith.constant 0.000000e+00 : f32
    %32 = vector.shape_cast %30 : vector<1x8x1xi1> to vector<1x8x1xi1>
    %33 = vector.broadcast %32 : vector<1x8x1xi1> to vector<10x8x32xi1>
    %34 = vector.broadcast %cst_9 : f32 to vector<10x8x32xf32>
    %35 = arith.select %33, %31, %34 : vector<10x8x32xi1>, vector<10x8x32xf32>
    %c7_i32 = arith.constant 7 : i32
    %36 = vector.broadcast %c7_i32 : i32 to vector<1x8x1xi32>
    %37 = arith.cmpi slt, %28, %36 : vector<1x8x1xi32>
    %c7_i32_10 = arith.constant 7 : i32
    %38 = tpu.dynamic_rotate %27 by %c7_i32_10 dim 1 : vector<10x8x32xf32>, i32 -> vector<10x8x32xf32>
    %cst_11 = arith.constant 0.000000e+00 : f32
    %39 = vector.shape_cast %37 : vector<1x8x1xi1> to vector<1x8x1xi1>
    %40 = vector.broadcast %39 : vector<1x8x1xi1> to vector<10x8x32xi1>
    %41 = vector.broadcast %cst_11 : f32 to vector<10x8x32xf32>
    %42 = arith.select %40, %38, %41 : vector<10x8x32xi1>, vector<10x8x32xf32>
    %c0_12 = arith.constant 0 : index
    %c0_13 = arith.constant 0 : index
    %43 = vector.load %arg5[%c0_12, %c0_13] : memref<9x32xf32, #tpu.memory_space<vmem>>, vector<9x32xf32>
    %cst_14 = arith.constant 0.000000e+00 : f32
    %44 = vector.broadcast %cst_14 : f32 to vector<8x8x32xf32>
    %45 = vector.extract_strided_slice %35 {offsets = [0, 0, 0], sizes = [8, 8, 32], strides = [1, 1, 1]} : vector<10x8x32xf32> to vector<8x8x32xf32>
    %46 = vector.extract_strided_slice %43 {offsets = [0, 0], sizes = [1, 32], strides = [1, 1]} : vector<9x32xf32> to vector<1x32xf32>
    %47 = vector.shape_cast %46 : vector<1x32xf32> to vector<32xf32>
    %48 = vector.shape_cast %47 : vector<32xf32> to vector<1x1x32xf32>
    %49 = vector.broadcast %48 : vector<1x1x32xf32> to vector<8x8x32xf32>
    %50 = arith.mulf %45, %49 : vector<8x8x32xf32>
    %51 = arith.addf %44, %50 : vector<8x8x32xf32>
    %52 = vector.extract_strided_slice %27 {offsets = [0, 0, 0], sizes = [8, 8, 32], strides = [1, 1, 1]} : vector<10x8x32xf32> to vector<8x8x32xf32>
    %53 = vector.extract_strided_slice %43 {offsets = [1, 0], sizes = [1, 32], strides = [1, 1]} : vector<9x32xf32> to vector<1x32xf32>
    %54 = vector.shape_cast %53 : vector<1x32xf32> to vector<32xf32>
    %55 = vector.shape_cast %54 : vector<32xf32> to vector<1x1x32xf32>
    %56 = vector.broadcast %55 : vector<1x1x32xf32> to vector<8x8x32xf32>
    %57 = arith.mulf %52, %56 : vector<8x8x32xf32>
    %58 = arith.addf %51, %57 : vector<8x8x32xf32>
    %59 = vector.extract_strided_slice %42 {offsets = [0, 0, 0], sizes = [8, 8, 32], strides = [1, 1, 1]} : vector<10x8x32xf32> to vector<8x8x32xf32>
    %60 = vector.extract_strided_slice %43 {offsets = [2, 0], sizes = [1, 32], strides = [1, 1]} : vector<9x32xf32> to vector<1x32xf32>
    %61 = vector.shape_cast %60 : vector<1x32xf32> to vector<32xf32>
    %62 = vector.shape_cast %61 : vector<32xf32> to vector<1x1x32xf32>
    %63 = vector.broadcast %62 : vector<1x1x32xf32> to vector<8x8x32xf32>
    %64 = arith.mulf %59, %63 : vector<8x8x32xf32>
    %65 = arith.addf %58, %64 : vector<8x8x32xf32>
    %66 = vector.extract_strided_slice %35 {offsets = [1, 0, 0], sizes = [8, 8, 32], strides = [1, 1, 1]} : vector<10x8x32xf32> to vector<8x8x32xf32>
    %67 = vector.extract_strided_slice %43 {offsets = [3, 0], sizes = [1, 32], strides = [1, 1]} : vector<9x32xf32> to vector<1x32xf32>
    %68 = vector.shape_cast %67 : vector<1x32xf32> to vector<32xf32>
    %69 = vector.shape_cast %68 : vector<32xf32> to vector<1x1x32xf32>
    %70 = vector.broadcast %69 : vector<1x1x32xf32> to vector<8x8x32xf32>
    %71 = arith.mulf %66, %70 : vector<8x8x32xf32>
    %72 = arith.addf %65, %71 : vector<8x8x32xf32>
    %73 = vector.extract_strided_slice %27 {offsets = [1, 0, 0], sizes = [8, 8, 32], strides = [1, 1, 1]} : vector<10x8x32xf32> to vector<8x8x32xf32>
    %74 = vector.extract_strided_slice %43 {offsets = [4, 0], sizes = [1, 32], strides = [1, 1]} : vector<9x32xf32> to vector<1x32xf32>
    %75 = vector.shape_cast %74 : vector<1x32xf32> to vector<32xf32>
    %76 = vector.shape_cast %75 : vector<32xf32> to vector<1x1x32xf32>
    %77 = vector.broadcast %76 : vector<1x1x32xf32> to vector<8x8x32xf32>
    %78 = arith.mulf %73, %77 : vector<8x8x32xf32>
    %79 = arith.addf %72, %78 : vector<8x8x32xf32>
    %80 = vector.extract_strided_slice %42 {offsets = [1, 0, 0], sizes = [8, 8, 32], strides = [1, 1, 1]} : vector<10x8x32xf32> to vector<8x8x32xf32>
    %81 = vector.extract_strided_slice %43 {offsets = [5, 0], sizes = [1, 32], strides = [1, 1]} : vector<9x32xf32> to vector<1x32xf32>
    %82 = vector.shape_cast %81 : vector<1x32xf32> to vector<32xf32>
    %83 = vector.shape_cast %82 : vector<32xf32> to vector<1x1x32xf32>
    %84 = vector.broadcast %83 : vector<1x1x32xf32> to vector<8x8x32xf32>
    %85 = arith.mulf %80, %84 : vector<8x8x32xf32>
    %86 = arith.addf %79, %85 : vector<8x8x32xf32>
    %87 = vector.extract_strided_slice %35 {offsets = [2, 0, 0], sizes = [8, 8, 32], strides = [1, 1, 1]} : vector<10x8x32xf32> to vector<8x8x32xf32>
    %88 = vector.extract_strided_slice %43 {offsets = [6, 0], sizes = [1, 32], strides = [1, 1]} : vector<9x32xf32> to vector<1x32xf32>
    %89 = vector.shape_cast %88 : vector<1x32xf32> to vector<32xf32>
    %90 = vector.shape_cast %89 : vector<32xf32> to vector<1x1x32xf32>
    %91 = vector.broadcast %90 : vector<1x1x32xf32> to vector<8x8x32xf32>
    %92 = arith.mulf %87, %91 : vector<8x8x32xf32>
    %93 = arith.addf %86, %92 : vector<8x8x32xf32>
    %94 = vector.extract_strided_slice %27 {offsets = [2, 0, 0], sizes = [8, 8, 32], strides = [1, 1, 1]} : vector<10x8x32xf32> to vector<8x8x32xf32>
    %95 = vector.extract_strided_slice %43 {offsets = [7, 0], sizes = [1, 32], strides = [1, 1]} : vector<9x32xf32> to vector<1x32xf32>
    %96 = vector.shape_cast %95 : vector<1x32xf32> to vector<32xf32>
    %97 = vector.shape_cast %96 : vector<32xf32> to vector<1x1x32xf32>
    %98 = vector.broadcast %97 : vector<1x1x32xf32> to vector<8x8x32xf32>
    %99 = arith.mulf %94, %98 : vector<8x8x32xf32>
    %100 = arith.addf %93, %99 : vector<8x8x32xf32>
    %101 = vector.extract_strided_slice %42 {offsets = [2, 0, 0], sizes = [8, 8, 32], strides = [1, 1, 1]} : vector<10x8x32xf32> to vector<8x8x32xf32>
    %102 = vector.extract_strided_slice %43 {offsets = [8, 0], sizes = [1, 32], strides = [1, 1]} : vector<9x32xf32> to vector<1x32xf32>
    %103 = vector.shape_cast %102 : vector<1x32xf32> to vector<32xf32>
    %104 = vector.shape_cast %103 : vector<32xf32> to vector<1x1x32xf32>
    %105 = vector.broadcast %104 : vector<1x1x32xf32> to vector<8x8x32xf32>
    %106 = arith.mulf %101, %105 : vector<8x8x32xf32>
    %107 = arith.addf %100, %106 : vector<8x8x32xf32>
    %c0_15 = arith.constant 0 : index
    %c0_16 = arith.constant 0 : index
    %108 = vector.load %arg6[%c0_15, %c0_16] : memref<1x32xf32, #tpu.memory_space<vmem>>, vector<1x32xf32>
    %109 = vector.shape_cast %108 : vector<1x32xf32> to vector<1x1x32xf32>
    %110 = vector.broadcast %109 : vector<1x1x32xf32> to vector<8x8x32xf32>
    %111 = arith.addf %107, %110 : vector<8x8x32xf32>
    %112 = vector.extract_strided_slice %27 {offsets = [1, 0, 0], sizes = [8, 8, 32], strides = [1, 1, 1]} : vector<10x8x32xf32> to vector<8x8x32xf32>
    %113 = arith.addf %111, %112 : vector<8x8x32xf32>
    %cst_17 = arith.constant dense<0.000000e+00> : vector<8x8xf32>
    %114 = vector.multi_reduction <add>, %113, %cst_17 [2] : vector<8x8x32xf32> to vector<8x8xf32>
    %115 = vector.shape_cast %114 : vector<8x8xf32> to vector<8x8x1xf32>
    %cst_18 = arith.constant 3.200000e+01 : f32
    %116 = vector.broadcast %cst_18 : f32 to vector<8x8x1xf32>
    %117 = arith.divf %115, %116 : vector<8x8x1xf32>
    %118 = vector.broadcast %117 : vector<8x8x1xf32> to vector<8x8x32xf32>
    %119 = arith.subf %113, %118 : vector<8x8x32xf32>
    %120 = arith.mulf %119, %119 : vector<8x8x32xf32>
    %cst_19 = arith.constant dense<0.000000e+00> : vector<8x8xf32>
    %121 = vector.multi_reduction <add>, %120, %cst_19 [2] : vector<8x8x32xf32> to vector<8x8xf32>
    %122 = vector.shape_cast %121 : vector<8x8xf32> to vector<8x8x1xf32>
    %cst_20 = arith.constant 3.200000e+01 : f32
    %123 = vector.broadcast %cst_20 : f32 to vector<8x8x1xf32>
    %124 = arith.divf %122, %123 : vector<8x8x1xf32>
    %cst_21 = arith.constant 9.99999974E-6 : f32
    %125 = vector.broadcast %cst_21 : f32 to vector<8x8x1xf32>
    %126 = arith.addf %124, %125 : vector<8x8x1xf32>
    %127 = math.rsqrt %126 : vector<8x8x1xf32>
    %128 = vector.broadcast %127 : vector<8x8x1xf32> to vector<8x8x32xf32>
    %129 = arith.mulf %119, %128 : vector<8x8x32xf32>
    %c0_22 = arith.constant 0 : index
    %c0_23 = arith.constant 0 : index
    %130 = vector.load %arg7[%c0_22, %c0_23] : memref<1x32xf32, #tpu.memory_space<vmem>>, vector<1x32xf32>
    %131 = vector.shape_cast %130 : vector<1x32xf32> to vector<1x1x32xf32>
    %132 = vector.broadcast %131 : vector<1x1x32xf32> to vector<8x8x32xf32>
    %133 = arith.mulf %129, %132 : vector<8x8x32xf32>
    %c0_24 = arith.constant 0 : index
    %c0_25 = arith.constant 0 : index
    %134 = vector.load %arg8[%c0_24, %c0_25] : memref<1x32xf32, #tpu.memory_space<vmem>>, vector<1x32xf32>
    %135 = vector.shape_cast %134 : vector<1x32xf32> to vector<1x1x32xf32>
    %136 = vector.broadcast %135 : vector<1x1x32xf32> to vector<8x8x32xf32>
    %137 = arith.addf %133, %136 : vector<8x8x32xf32>
    %cst_26 = arith.constant 5.000000e-01 : f32
    %138 = vector.broadcast %cst_26 : f32 to vector<8x8x32xf32>
    %139 = arith.mulf %138, %137 : vector<8x8x32xf32>
    %cst_27 = arith.constant 0.707106769 : f32
    %140 = vector.broadcast %cst_27 : f32 to vector<8x8x32xf32>
    %141 = arith.mulf %137, %140 : vector<8x8x32xf32>
    %142 = math.erf %141 : vector<8x8x32xf32>
    %cst_28 = arith.constant 1.000000e+00 : f32
    %143 = vector.broadcast %cst_28 : f32 to vector<8x8x32xf32>
    %144 = arith.addf %143, %142 : vector<8x8x32xf32>
    %145 = arith.mulf %139, %144 : vector<8x8x32xf32>
    %146 = vector.shape_cast %145 : vector<8x8x32xf32> to vector<64x32xf32>
    %147 = arith.truncf %146 : vector<64x32xf32> to vector<64x32xbf16>
    %c0_29 = arith.constant 0 : index
    %c0_30 = arith.constant 0 : index
    %148 = vector.load %arg9[%c0_29, %c0_30] : memref<32x4xbf16, #tpu.memory_space<vmem>>, vector<32x4xbf16>
    %cst_31 = arith.constant dense<0.000000e+00> : vector<64x4xf32>
    %149 = tpu.matmul %147, %148, %cst_31 {dimension_numbers = #tpu.dot_dimension_numbers<[1], [0], [0], [1], [0, 0, 1, 1], [], []>} : vector<64x32xbf16>, vector<32x4xbf16>, vector<64x4xf32> -> vector<64x4xf32>
    %c0_32 = arith.constant 0 : index
    %c0_33 = arith.constant 0 : index
    %150 = vector.load %arg10[%c0_32, %c0_33] : memref<1x4xf32, #tpu.memory_space<vmem>>, vector<1x4xf32>
    %151 = vector.broadcast %150 : vector<1x4xf32> to vector<64x4xf32>
    %152 = arith.addf %149, %151 : vector<64x4xf32>
    %153 = vector.shape_cast %152 : vector<64x4xf32> to vector<8x8x4xf32>
    %c0_34 = arith.constant 0 : index
    %c0_35 = arith.constant 0 : index
    %c0_36 = arith.constant 0 : index
    %c0_37 = arith.constant 0 : index
    %154 = vector.load %arg11[%c0_34, %c0_35, %c0_36, %c0_37] : memref<1x8x8x4xf32, #tpu.memory_space<vmem>>, vector<1x8x8x4xf32>
    %155 = vector.shape_cast %154 : vector<1x8x8x4xf32> to vector<8x8x4xf32>
    %156 = vector.shape_cast %153 : vector<8x8x4xf32> to vector<1x8x8x4xf32>
    tpu.vector_store %arg11[%c0_34, %c0_35, %c0_36, %c0_37], %156 {strides = array<i32>} : memref<1x8x8x4xf32, #tpu.memory_space<vmem>>, vector<1x8x8x4xf32>,
    return
  }
  func.func @transform_0(%arg0: i32, %arg1: i32) -> (i32, i32, i32) {
    %c0_i32 = arith.constant 0 : i32
    %c0_i32_0 = arith.constant 0 : i32
    %c0_i32_1 = arith.constant 0 : i32
    return %arg0, %c0_i32, %c0_i32_0 : i32, i32, i32
  }
  func.func @transform_1(%arg0: i32, %arg1: i32) -> (i32, i32) {
    %c0_i32 = arith.constant 0 : i32
    %c0_i32_0 = arith.constant 0 : i32
    %c0_i32_1 = arith.constant 0 : i32
    return %c0_i32, %c0_i32_0 : i32, i32
  }
  func.func @transform_2(%arg0: i32, %arg1: i32) -> (i32, i32) {
    %c0_i32 = arith.constant 0 : i32
    %c0_i32_0 = arith.constant 0 : i32
    %c0_i32_1 = arith.constant 0 : i32
    return %c0_i32, %c0_i32_0 : i32, i32
  }
  func.func @transform_3(%arg0: i32, %arg1: i32) -> (i32, i32) {
    %c0_i32 = arith.constant 0 : i32
    %c0_i32_0 = arith.constant 0 : i32
    %c0_i32_1 = arith.constant 0 : i32
    return %c0_i32, %c0_i32_0 : i32, i32
  }
  func.func @transform_4(%arg0: i32, %arg1: i32) -> (i32, i32) {
    %c0_i32 = arith.constant 0 : i32
    %c0_i32_0 = arith.constant 0 : i32
    %c0_i32_1 = arith.constant 0 : i32
    return %c0_i32, %c0_i32_0 : i32, i32
  }
  func.func @transform_5(%arg0: i32, %arg1: i32) -> (i32, i32) {
    %c0_i32 = arith.constant 0 : i32
    %c0_i32_0 = arith.constant 0 : i32
    %c0_i32_1 = arith.constant 0 : i32
    return %c0_i32, %c0_i32_0 : i32, i32
  }
  func.func @transform_6(%arg0: i32, %arg1: i32) -> (i32, i32) {
    %c0_i32 = arith.constant 0 : i32
    %c0_i32_0 = arith.constant 0 : i32
    %c0_i32_1 = arith.constant 0 : i32
    return %c0_i32, %c0_i32_0 : i32, i32
  }
  func.func @transform_7(%arg0: i32, %arg1: i32) -> (i32, i32) {
    %c0_i32 = arith.constant 0 : i32
    %c0_i32_0 = arith.constant 0 : i32
    %c0_i32_1 = arith.constant 0 : i32
    return %c0_i32, %c0_i32_0 : i32, i32
  }
  func.func @transform_8(%arg0: i32, %arg1: i32) -> (i32, i32) {
    %c0_i32 = arith.constant 0 : i32
    %c0_i32_0 = arith.constant 0 : i32
    %c0_i32_1 = arith.constant 0 : i32
    return %c0_i32, %c0_i32_0 : i32, i32
  }
  func.func @transform_9(%arg0: i32, %arg1: i32) -> (i32, i32, i32, i32) {
    %c0_i32 = arith.constant 0 : i32
    %c0_i32_0 = arith.constant 0 : i32
    %c0_i32_1 = arith.constant 0 : i32
    return %arg0, %arg1, %c0_i32, %c0_i32_0 : i32, i32, i32, i32
  }
}

</mosaic_0001>

<bundles_post_ra>
// kernel: tpu_custom_call.1
= control target key start
LH: loop header
LB: loop body
LE: loop exit
PB: predicated region body
PF: predicated region fallthrough
CT: control target
= control target key end

     0   :  { %s1334_s30 = smov 0   ;;  %s1336_s10 = smov 0   ;;  %s1752_s0 = inlined_call_operand.vmem [shape: f32[2,80,4], index: 0, kind: input, shape index: {}]   ;;  %s1753_s1 = inlined_call_operand.vmem [shape: bf16[4,32], index: 1, kind: input, shape index: {}]   ;;  %s1754_s2 = inlined_call_operand.vmem [shape: f32[1,32], index: 2, kind: input, shape index: {}]   ;;  %s1755_s3 = inlined_call_operand.vmem [shape: f32[9,32], index: 3, kind: input, shape index: {}]   ;;  %s1756_s4 = inlined_call_operand.vmem [shape: f32[1,32], index: 4, kind: input, shape index: {}]   ;;  %s1757_s5 = inlined_call_operand.vmem [shape: f32[1,32], index: 5, kind: input, shape index: {}]   ;;  %s1758_s6 = inlined_call_operand.vmem [shape: f32[1,32], index: 6, kind: input, shape index: {}]   ;;  %s1759_s7 = inlined_call_operand.vmem [shape: bf16[32,4], index: 7, kind: input, shape index: {}]   ;;  %s1760_s8 = inlined_call_operand.vmem [shape: f32[1,4], index: 8, kind: input, shape index: {}]   ;;  %s1761_s9 = inlined_call_operand.vmem [shape: f32[2,8,8,4], index: 9, kind: output, shape index: {}]  }
   0x1   :  { %s1338_s11 = smov 0  }
   0x2 LB: > { %s31_s12 = sadd.s32 1, %s1276_s10  ;;  %p1125_p0 = scmp.ge.s32.totalorder %s1280_s11, 1  ;;  %s1280_s11 = sphi %s1338_s11, %s19_s11   ;;  %s1276_s10 = sphi %s1336_s10, %s1763_s10   ;;  %s1272_s30 = sphi %s1334_s30, %s1762_s30  }
   0x3   : > { %p33_p1 = scmp.ge.s32.totalorder %s31_s12, 2  ;;  %p301_p2 = scmp.lt.s32.totalorder %s1280_s11, 3 }
   0x5   : > { %s1765_s12 = smov (%p33_p1, %s31_s12), 0  ;;  %p302_p3 = pnand %p1125_p0, %p301_p2 }
   0x6   : > { %p341_p4 = scmp.lt.s32.totalorder (!%p302_p3), %s1272_s30, 1 }
   0x7   : > { %305 = sbr.rel (%p302_p3) target bundleno = 809 (0x329), region = 56 }
   0xc   : > { %v374_v0 = vld [vmem:[%s1753_s1] sm:$0x3]  ;;  %vm398_vm0 = vcmask 1041408   ;;  %v1282_v1 = vmov 0.0   ;;  %vm1283_vm1 = vmmov 0   ;;  %s1767_s30 = smov (!%p341_p4, %s1272_s30), 1  ;;  %v497_v18 = vlaneseq }
   0xd   : > { %1161 = vmatprep.subr.bf16.mxu0 %v1282_v1  ;;  %v400_v2 = vsel %vm398_vm0, %v374_v0, 0  ;;  %1163 = vmatprep.mubr.msk.bf16.mxu0 %vm1283_vm1, %v1282_v1  ;;  %s1197_s15 = smul.u32 80, %s1767_s30  ;;  %vm382_vm2 = vcmask 31744   ;;  %v545_v22 = vld [vmem:[%s1755_s3] sm:$0xff]  ;;  %v500_v23 = vrot.slane %v1282_v1, 7  ;;  %v523_v28 = vrot.slane %v1282_v1, 1 }
   0xe   : > { %1162 = vmatpush3.bf16.msra.mxu0 %v400_v2  ;;  %1195 = vmatprep.subr.bf16.mxu1 %v1282_v1  ;;  %v1371_v19 = vshrl.u32 %v497_v18, 7  ;;  %v1401_v35 = vld [vmem:[%s1754_s2] ss:$0 sm:$0xff]  ;;  %vm750_vm5 = vcmask 261120  }
   0xf   : > { %1196 = vmatpush3.bf16.msra.mxu1 %v400_v2  ;;  %1179 = vmatprep.mubr.msk.bf16.mxu1 %vm1283_vm1, %v1282_v1  ;;  %s345_s18 = scalar_lea.vmem %s1752_s0, %s1197_s15 }
  0x10   : > { %v359_v3 = vld [vmem:[%s345_s18] sm:$0xff]  ;;  %v360_v4 = vld [vmem:[%s345_s18 + $0x8] sm:$0xff]  ;;  %v361_v8 = vld [vmem:[%s345_s18 + $0x10] sm:$0xff]  ;;  %v549_v20 = vsub.s32 0, %v1371_v19  ;;  %v569_v21 = vsub.s32 1, %v1371_v19  ;;  %vm499_vm3 = vcmp.gt.s32.totalorder %v1371_v19, 0 }
  0x11   : > { %v369_v5 = vpack.c.bf16 %v360_v4, %v359_v3  ;;  %v367_v6 = vld [vmem:[%s345_s18 + $0x40] sm:$0xff]  ;;  %v368_v7 = vld [vmem:[%s345_s18 + $0x48] sm:$0xff]  ;;  %v362_v9 = vld [vmem:[%s345_s18 + $0x18] sm:$0xff]  ;;  %v589_v26 = vsub.s32 2, %v1371_v19  ;;  %v1386_v27 = vsel %vm499_vm3, %v500_v23, 0.0  ;;  %vm522_vm4 = vcmp.lt.s32.totalorder %v1371_v19, 7 }
  0x12   : > { %v373_v10 = vpack.c.bf16 %v368_v7, %v367_v6  ;;  %v370_v11 = vpack.c.bf16 %v362_v9, %v361_v8  ;;  %v363_v12 = vld [vmem:[%s345_s18 + $0x20] sm:$0xff]  ;;  %v364_v13 = vld [vmem:[%s345_s18 + $0x28] sm:$0xff]  ;;  %v365_v15 = vld [vmem:[%s345_s18 + $0x30] sm:$0xff]  ;;  %v1379_v24 = vrot.slane %v545_v22, %v549_v20  ;;  %v1381_v25 = vrot.slane %v545_v22, %v569_v21 }
  0x13   : > { %1164 = vmatmul.mubr.msk.bf16.vlgmr.msra.gmra.mxu0 %vm382_vm2, %v369_v5  ;;  %v371_v14 = vpack.c.bf16 %v364_v13, %v363_v12  ;;  %v366_v16 = vld [vmem:[%s345_s18 + $0x38] sm:$0xff]  ;;  %v1392_v32 = vrot.slane %v545_v22, %v589_v26  ;;  %v1396_v33 = vsel %vm522_vm4, %v523_v28, 0.0  ;;  %v609_v36 = vsub.s32 3, %v1371_v19  ;;  %s1148_s18 = sshll.u32 %s1767_s30, 6 }
  0x14   : > { %1167 = vmatprep.mubr.msk.bf16.mxu0 %vm1283_vm1, %v1282_v1  ;;  %1180 = vmatmul.mubr.msk.bf16.vlgmr.msra.gmra.mxu1 %vm382_vm2, %v373_v10  ;;  %v372_v17 = vpack.c.bf16 %v366_v16, %v365_v15  ;;  %v551_v30 = vmul.f32 %v1379_v24, %v1386_v27  ;;  %v571_v31 = vmul.f32 0.0, %v1381_v25  ;;  %v629_v39 = vsub.s32 4, %v1371_v19  ;;  %s354_s23 = scalar_lea.vmem %s1761_s9, %s1148_s18 }
  0x15   : > { %v591_v42 = vmul.f32 %v1392_v32, %v1396_v33  ;;  %v649_v45 = vsub.s32 5, %v1371_v19  ;;  %v1414_v46 = vrot.slane %v545_v22, %v609_v36  ;;  %v669_v51 = vsub.s32 6, %v1371_v19 }
  0x16   : > { %v579_v41 = vadd.f32 %v571_v31, %v551_v30  ;;  %v689_v52 = vsub.s32 7, %v1371_v19  ;;  %v1421_v54 = vrot.slane %v545_v22, %v629_v39  ;;  %v1471_v30 = vld [vmem:[%s1755_s3 + $0x8] ss:$0 sm:$0xff] }
  0x17   : > { %v1430_v60 = vrot.slane %v545_v22, %v649_v45  ;;  %v1442_v5 = vrot.slane %v545_v22, %v669_v51 }
  0x18   : > { %v599_v56 = vadd.f32 %v591_v42, %v579_v41  ;;  %v1444_v6 = vrot.slane %v545_v22, %v689_v52 }
  0x1b   : > { %1168 = vmatmul.mubr.msk.bf16.gmra.mxu0 %vm382_vm2, %v370_v11 }
  0x1c   : > { %1171 = vmatprep.mubr.msk.bf16.mxu0 %vm1283_vm1, %v1282_v1 }
  0x23   : > { %1172 = vmatmul.mubr.msk.bf16.gmra.mxu0 %vm382_vm2, %v371_v14 }
  0x24   : > { %1175 = vmatprep.mubr.msk.bf16.mxu0 %vm1283_vm1, %v1282_v1 }
  0x2b   : > { %1176 = vmatmul.mubr.msk.bf16.gmra.mxu0 %vm382_vm2, %v372_v17 }
  0xd3   : > { %v436_v29 = vpop.f32.mrf.mxu0 }
  0xd4   : > { %v468_v37 = vpop.f32.mrf.mxu1 }
  0xd5   : > { %v1165_v34 = vpop.f32.mrf.mxu0  ;;  %v1406_v40 = vadd.f32 %v1401_v35, %v468_v37 }
  0xd6   : > { %v1181_v44 = vpop.f32.mrf.mxu1 }
  0xd7   : > { %v439_v38 = vpop.f32.mrf.mxu0  ;;  %v508_v48 = vrot.slane %v1406_v40, 7  ;;  %v531_v14 = vrot.slane %v1406_v40, 1 }
  0xd8   : > { %v1411_v43 = vadd.f32 %v1401_v35, %v439_v38  ;;  %v471_v53 = vpop.f32.mrf.mxu1 }
  0xd9   : > { %v1166_v47 = vpop.f32.mrf.mxu0  ;;  %v1438_v2 = vsel %vm499_vm3, %v508_v48, 0.0 }
  0xda   : > { %v501_v49 = vrot.slane %v1411_v43, 7  ;;  %v524_v50 = vrot.slane %v1411_v43, 1  ;;  %v1182_v61 = vpop.f32.mrf.mxu1  ;;  %v572_v63 = vmul.f32 %v1381_v25, %v1411_v43  ;;  %v631_v8 = vmul.f32 %v1421_v54, %v1411_v43 }
  0xdb   : > { %v444_v55 = vpop.f32.mrf.mxu0  ;;  %v1457_v15 = vmul.f32 %v1414_v46, %v1438_v2 }
  0xdc   : > { %v513_v57 = vsel %vm499_vm3, %v501_v49, 0.0  ;;  %v1426_v58 = vadd.f32 %v1401_v35, %v444_v55  ;;  %v536_v59 = vsel %vm522_vm4, %v524_v50, 0.0 }
  0xdd   : > { %v552_v62 = vmul.f32 %v1379_v24, %v513_v57  ;;  %v611_v0 = vmul.f32 %v1414_v46, %v513_v57  ;;  %v1169_v1 = vpop.f32.mrf.mxu0  ;;  %v592_v10 = vmul.f32 %v1392_v32, %v536_v59  ;;  %v651_v21 = vmul.f32 %v1430_v60, %v536_v59 }
  0xde   : > { %v502_v3 = vrot.slane %v1426_v58, 7  ;;  %v525_v4 = vrot.slane %v1426_v58, 1  ;;  %v573_v22 = vmul.f32 %v1381_v25, %v1426_v58  ;;  %v691_v26 = vmul.f32 %v1444_v6, %v1426_v58 }
  0xdf   : > { %v580_v7 = vadd.f32 %v572_v63, %v552_v62  ;;  %v447_v9 = vpop.f32.mrf.mxu0  ;;  %v619_v11 = vadd.f32 %v611_v0, %v599_v56  ;;  %v632_v42 = vmul.f32 %v1421_v54, %v1426_v58  ;;  %v1496_v62 = vld [vmem:[%s1756_s4] ss:$0 sm:$0xff] }
  0xe0   : > { %v1450_v12 = vadd.f32 %v1401_v35, %v447_v9  ;;  %v514_v13 = vsel %vm499_vm3, %v502_v3, 0.0  ;;  %v537_v17 = vsel %vm522_vm4, %v525_v4, 0.0 }
  0xe1   : > { %v1170_v16 = vpop.f32.mrf.mxu0  ;;  %v600_v18 = vadd.f32 %v592_v10, %v580_v7  ;;  %v639_v20 = vadd.f32 %v631_v8, %v619_v11  ;;  %v671_v23 = vmul.f32 %v1442_v5, %v514_v13  ;;  %v553_v28 = vmul.f32 %v1379_v24, %v514_v13 }
  0xe2   : > { %v612_v34 = vmul.f32 %v1414_v46, %v514_v13  ;;  %v503_v36 = vrot.slane %v1450_v12, 7  ;;  %v526_v37 = vrot.slane %v1450_v12, 1  ;;  %v593_v39 = vmul.f32 %v1392_v32, %v537_v17 }
  0xe3   : > { %v452_v29 = vpop.f32.mrf.mxu0  ;;  %v659_v31 = vadd.f32 %v651_v21, %v639_v20  ;;  %v581_v41 = vadd.f32 %v573_v22, %v553_v28  ;;  %v652_v45 = vmul.f32 %v1430_v60, %v537_v17  ;;  %v574_v50 = vmul.f32 %v1381_v25, %v1450_v12 }
  0xe4   : > { %v1477_v38 = vadd.f32 %v1401_v35, %v452_v29  ;;  %v515_v48 = vsel %vm499_vm3, %v503_v36, 0.0  ;;  %v620_v49 = vadd.f32 %v612_v34, %v600_v18  ;;  %v711_v51 = vmul.f32 %v1471_v30, %v537_v17 }
  0xe5   : > { %v1173_v44 = vpop.f32.mrf.mxu0  ;;  %v679_v47 = vadd.f32 %v671_v23, %v659_v31  ;;  %v601_v52 = vadd.f32 %v593_v39, %v581_v41  ;;  %v692_v53 = vmul.f32 %v1444_v6, %v1450_v12  ;;  %v538_v57 = vsel %vm522_vm4, %v526_v37, 0.0 }
  0xe6   : > { %v640_v59 = vadd.f32 %v632_v42, %v620_v49  ;;  %v554_v61 = vmul.f32 %v1379_v24, %v515_v48  ;;  %v613_v63 = vmul.f32 %v1414_v46, %v515_v48  ;;  %v504_v0 = vrot.slane %v1477_v38, 7 }
  0xe7   : > { %v455_v55 = vpop.f32.mrf.mxu0  ;;  %v699_v56 = vadd.f32 %v691_v26, %v679_v47  ;;  %v527_v1 = vrot.slane %v1477_v38, 1  ;;  %v633_v3 = vmul.f32 %v1421_v54, %v1450_v12  ;;  %v672_v9 = vmul.f32 %v1442_v5, %v515_v48 }
  0xe8   : > { %v660_v8 = vadd.f32 %v652_v45, %v640_v59  ;;  %v582_v10 = vadd.f32 %v574_v50, %v554_v61  ;;  %v594_v11 = vmul.f32 %v1392_v32, %v538_v57  ;;  %v653_v13 = vmul.f32 %v1430_v60, %v538_v57 }
  0xe9   : > { %v1174_v4 = vpop.f32.mrf.mxu0  ;;  %v719_v7 = vadd.f32 %v711_v51, %v699_v56  ;;  %v539_v16 = vsel %vm522_vm4, %v527_v1, 0.0  ;;  %v621_v17 = vadd.f32 %v613_v63, %v601_v52  ;;  %v1509_v18 = vadd.f32 %v1401_v35, %v455_v55 }
  0xea   : > { %v680_v22 = vadd.f32 %v672_v9, %v660_v8  ;;  %v516_v23 = vsel %vm499_vm3, %v504_v0, 0.0  ;;  %v712_v26 = vmul.f32 %v1471_v30, %v538_v57  ;;  %v602_v28 = vadd.f32 %v594_v11, %v582_v10 }
  0xeb   : > { %v460_v20 = vpop.f32.mrf.mxu0  ;;  %v734_v21 = vadd.f32 %v1496_v62, %v719_v7  ;;  %v575_v29 = vmul.f32 %v1381_v25, %v1477_v38  ;;  %v641_v31 = vadd.f32 %v633_v3, %v621_v17  ;;  %v595_v41 = vmul.f32 %v1392_v32, %v539_v16 }
  0xec   : > { %v1518_v34 = vadd.f32 %v1401_v35, %v460_v20  ;;  %v700_v39 = vadd.f32 %v692_v53, %v680_v22  ;;  %v673_v44 = vmul.f32 %v1442_v5, %v516_v23  ;;  %v555_v45 = vmul.f32 %v1379_v24, %v516_v23 }
  0xed   : > { %v1177_v36 = vpop.f32.mrf.mxu0  ;;  %v1521_v37 = vadd.f32 %v734_v21, %v1411_v43  ;;  %v661_v42 = vadd.f32 %v653_v13, %v641_v31  ;;  %v614_v47 = vmul.f32 %v1414_v46, %v516_v23  ;;  %v505_v51 = vrot.slane %v1509_v18, 7 }
  0xee   : > { %v720_v50 = vadd.f32 %v712_v26, %v700_v39  ;;  %v528_v43 = vrot.slane %v1509_v18, 1  ;;  %v693_v53 = vmul.f32 %v1444_v6, %v1477_v38  ;;  %v583_v55 = vadd.f32 %v575_v29, %v555_v45 }
  0xef   : > { %v463_v48 = vpop.f32.mrf.mxu0  ;;  %v751_v49 = vsel %vm750_vm5, %v1521_v37, 0.0  ;;  %v681_v52 = vadd.f32 %v673_v44, %v661_v42  ;;  %v622_v56 = vadd.f32 %v614_v47, %v602_v28  ;;  %v517_v61 = vsel %vm499_vm3, %v505_v51, 0.0 }
  0xf0   : > { %752 = vadd.xlane.f32.xlu0 %v751_v49  ;;  %v735_v59 = vadd.f32 %v1496_v62, %v720_v50  ;;  %v540_v63 = vsel %vm522_vm4, %v528_v43, 0.0  ;;  %v634_v0 = vmul.f32 %v1421_v54, %v1477_v38  ;;  %v576_v1 = vmul.f32 %v1381_v25, %v1509_v18 }
  0xf1   : > { %v1178_v57 = vpop.f32.mrf.mxu0  ;;  %v654_v3 = vmul.f32 %v1430_v60, %v539_v16  ;;  %v701_v4 = vadd.f32 %v693_v53, %v681_v52  ;;  %v713_v7 = vmul.f32 %v1471_v30, %v539_v16  ;;  %v1545_v8 = vadd.f32 %v1401_v35, %v463_v48 }
  0xf2   : > { %v1548_v9 = vadd.f32 %v735_v59, %v1426_v58  ;;  %v603_v10 = vadd.f32 %v595_v41, %v583_v55  ;;  %v642_v11 = vadd.f32 %v634_v0, %v622_v56  ;;  %v596_v17 = vmul.f32 %v1392_v32, %v540_v63 }
  0xf3   : > { %v721_v13 = vadd.f32 %v713_v7, %v701_v4  ;;  %v674_v20 = vmul.f32 %v1442_v5, %v517_v61  ;;  %v556_v21 = vmul.f32 %v1379_v24, %v517_v61  ;;  %v615_v16 = vmul.f32 %v1414_v46, %v517_v61 }
  0xf4   : > { %v754_v22 = vsel %vm750_vm5, %v1548_v9, 0.0  ;;  %v662_v23 = vadd.f32 %v654_v3, %v642_v11  ;;  %v506_v35 = vrot.slane %v1518_v34, 7  ;;  %v694_v26 = vmul.f32 %v1444_v6, %v1509_v18 }
  0xf5   : > { %755 = vadd.xlane.f32.xlu0 %v754_v22  ;;  %v736_v58 = vadd.f32 %v1496_v62, %v721_v13  ;;  %v584_v28 = vadd.f32 %v576_v1, %v556_v21  ;;  %v529_v29 = vrot.slane %v1518_v34, 1  ;;  %v623_v39 = vadd.f32 %v615_v16, %v603_v10 }
  0xf6   : > { %v682_v31 = vadd.f32 %v674_v20, %v662_v23  ;;  %v518_v36 = vsel %vm499_vm3, %v506_v35, 0.0  ;;  %v635_v41 = vmul.f32 %v1421_v54, %v1509_v18  ;;  %v577_v42 = vmul.f32 %v1381_v25, %v1518_v34 }
  0xf7   : > { %v1568_v44 = vadd.f32 %v736_v58, %v1450_v12  ;;  %v655_v45 = vmul.f32 %v1430_v60, %v540_v63  ;;  %v604_v47 = vadd.f32 %v596_v17, %v584_v28  ;;  %v714_v49 = vmul.f32 %v1471_v30, %v540_v63 }
  0xf8   : > { %v702_v48 = vadd.f32 %v694_v26, %v682_v31  ;;  %v541_v50 = vsel %vm522_vm4, %v529_v29, 0.0  ;;  %v643_v51 = vadd.f32 %v635_v41, %v623_v39  ;;  %v675_v52 = vmul.f32 %v1442_v5, %v518_v36 }
  0xf9   : > { %v757_v43 = vsel %vm750_vm5, %v1568_v44, 0.0  ;;  %v557_v53 = vmul.f32 %v1379_v24, %v518_v36  ;;  %v616_v12 = vmul.f32 %v1414_v46, %v518_v36  ;;  %v507_v57 = vrot.slane %v1545_v8, 7 }
  0xfa   : > { %758 = vadd.xlane.f32.xlu1 %v757_v43  ;;  %v722_v55 = vadd.f32 %v714_v49, %v702_v48  ;;  %v663_v56 = vadd.f32 %v655_v45, %v643_v51  ;;  %v530_v59 = vrot.slane %v1545_v8, 1  ;;  %v597_v61 = vmul.f32 %v1392_v32, %v541_v50 }
  0xfb   : > { %v585_v63 = vadd.f32 %v577_v42, %v557_v53  ;;  %v624_v0 = vadd.f32 %v616_v12, %v604_v47  ;;  %v636_v1 = vmul.f32 %v1421_v54, %v1518_v34  ;;  %v695_v7 = vmul.f32 %v1444_v6, %v1518_v34 }
  0xfc   : > { %v737_v3 = vadd.f32 %v1496_v62, %v722_v55  ;;  %v683_v4 = vadd.f32 %v675_v52, %v663_v56  ;;  %v519_v10 = vsel %vm499_vm3, %v507_v57, 0.0  ;;  %v656_v11 = vmul.f32 %v1430_v60, %v541_v50 }
  0xfd   : > { %v605_v13 = vadd.f32 %v597_v61, %v585_v63  ;;  %v542_v17 = vsel %vm522_vm4, %v530_v59, 0.0  ;;  %v644_v20 = vadd.f32 %v636_v1, %v624_v0  ;;  %v578_v21 = vmul.f32 %v1381_v25, %v1545_v8 }
  0xfe   : > { %v1595_v22 = vadd.f32 %v737_v3, %v1477_v38  ;;  %v703_v23 = vadd.f32 %v695_v7, %v683_v4  ;;  %v715_v16 = vmul.f32 %v1471_v30, %v541_v50  ;;  %v676_v58 = vmul.f32 %v1442_v5, %v519_v10 }
  0xff   : > { %v664_v35 = vadd.f32 %v656_v11, %v644_v20  ;;  %v558_v26 = vmul.f32 %v1379_v24, %v519_v10  ;;  %v617_v28 = vmul.f32 %v1414_v46, %v519_v10  ;;  %v598_v36 = vmul.f32 %v1392_v32, %v542_v17 }
 0x100   : > { %v760_v29 = vsel %vm750_vm5, %v1595_v22, 0.0  ;;  %v723_v31 = vadd.f32 %v715_v16, %v703_v23  ;;  %v696_v25 = vmul.f32 %v1444_v6, %v1545_v8  ;;  %v637_v42 = vmul.f32 %v1421_v54, %v1545_v8 }
 0x101   : > { %761 = vadd.xlane.f32.xlu1 %v760_v29  ;;  %v684_v38 = vadd.f32 %v676_v58, %v664_v35  ;;  %v586_v39 = vadd.f32 %v578_v21, %v558_v26  ;;  %v625_v41 = vadd.f32 %v617_v28, %v605_v13  ;;  %v657_v46 = vmul.f32 %v1430_v60, %v542_v17 }
 0x102   : > { %v738_v24 = vadd.f32 %v1496_v62, %v723_v31  ;;  %v716_v47 = vmul.f32 %v1471_v30, %v542_v17  ;;  %v638_v32 = vmul.f32 %v1421_v54, %v1406_v40  ;;  %v543_v51 = vsel %vm522_vm4, %v531_v14, 0.0 }
 0x103   : > { %v704_v45 = vadd.f32 %v696_v25, %v684_v38  ;;  %v606_v48 = vadd.f32 %v598_v36, %v586_v39  ;;  %v645_v49 = vadd.f32 %v637_v42, %v625_v41  ;;  %v677_v53 = vmul.f32 %v1442_v5, %v1438_v2 }
 0x104   : > { %v746_v50 = vadd.f32 %v738_v24, %v1509_v18  ;;  %v697_v56 = vmul.f32 %v1444_v6, %v1406_v40  ;;  %v678_v54 = vmul.f32 %v1442_v5, %v1386_v27  ;;  %v658_v19 = vmul.f32 %v1430_v60, %v543_v51 }
 0x105   : > { %v724_v43 = vadd.f32 %v716_v47, %v704_v45  ;;  %v665_v52 = vadd.f32 %v657_v46, %v645_v49  ;;  %v626_v12 = vadd.f32 %v1457_v15, %v606_v48  ;;  %v698_v59 = vmul.f32 0.0, %v1444_v6 }
 0x106   : > { %v763_v55 = vsel %vm750_vm5, %v746_v50, 0.0  ;;  %v717_v61 = vmul.f32 %v1471_v30, %v543_v51  ;;  %v718_v27 = vmul.f32 %v1471_v30, %v1396_v33 }
 0x107   : > { %764 = vadd.xlane.f32.xlu0 %v763_v55  ;;  %v739_v18 = vadd.f32 %v1496_v62, %v724_v43  ;;  %v685_v14 = vadd.f32 %v677_v53, %v665_v52  ;;  %v646_v57 = vadd.f32 %v638_v32, %v626_v12  ;;  %v1224_v55 = vld [vmem:[%s1759_s7 + $0x8] sm:$0xff]  }
 0x108   : > { %1183 = vmatprep.subr.bf16.mxu1 %v1224_v55 }
 0x109   : > { %v747_v2 = vadd.f32 %v739_v18, %v1518_v34  ;;  %v705_v15 = vadd.f32 %v697_v56, %v685_v14  ;;  %v666_v63 = vadd.f32 %v658_v19, %v646_v57  ;;  %v1225_v56 = vld [vmem:[%s1759_s7] sm:$0xff]   ;;  %1184 = vmatpush3.bf16.msra.mxu1 %v1224_v55 }
 0x10a   : > { %1185 = vmatprep.subr.bf16.mxu1 %v1225_v56 }
 0x10b   : > { %v766_v0 = vsel %vm750_vm5, %v747_v2, 0.0  ;;  %v725_v1 = vadd.f32 %v717_v61, %v705_v15  ;;  %v686_v3 = vadd.f32 %v678_v54, %v666_v63 }
 0x10c   : > { %767 = vadd.xlane.f32.xlu1 %v766_v0  ;;  %v1693_v0 = vld [vmem:[%s1757_s5] ss:$0 sm:$0xff] }
 0x10d   : > { %v740_v60 = vadd.f32 %v1496_v62, %v725_v1  ;;  %v706_v5 = vadd.f32 %v698_v59, %v686_v3  ;;  %1186 = vmatpush3.bf16.msra.mxu1 %v1225_v56 }
 0x10f   : > { %v748_v4 = vadd.f32 %v740_v60, %v1545_v8  ;;  %v726_v6 = vadd.f32 %v718_v27, %v706_v5  ;;  %v1699_v60 = vld [vmem:[%s1758_s6] ss:$0 sm:$0xff] }
 0x111   : > { %v769_v34 = vsel %vm750_vm5, %v748_v4, 0.0  ;;  %v741_v7 = vadd.f32 %v1496_v62, %v726_v6 }
 0x112   : > { %770 = vadd.xlane.f32.xlu0 %v769_v34 }
 0x113   : > { %v749_v10 = vadd.f32 %v741_v7, %v1406_v40 }
 0x115   : > { %v772_v11 = vsel %vm750_vm5, %v749_v10, 0.0 }
 0x116   : > { %773 = vadd.xlane.f32.xlu1 %v772_v11 }
 0x179   : > { %v753_v13 = vpop.xlane.xlu0 %752 }
 0x17a   : > { %v776_v17 = vmul.f32 0.03125, %v753_v13 }
 0x17c   : > { %v1641_v33 = vsub.f32 %v1521_v37, %v776_v17 }
 0x17e   : > { %v792_v30 = vmul.f32 %v1641_v33, %v1641_v33  ;;  %v756_v8 = vpop.xlane.xlu0 %755 }
 0x17f   : > { %v777_v20 = vmul.f32 0.03125, %v756_v8 }
 0x180   : > { %v800_v21 = vsel %vm750_vm5, %v792_v30, 0.0 }
 0x181   : > { %801 = vadd.xlane.f32.xlu0 %v800_v21  ;;  %v1647_v62 = vsub.f32 %v1548_v9, %v777_v20 }
 0x183   : > { %v759_v40 = vpop.xlane.xlu1 %758  ;;  %v793_v23 = vmul.f32 %v1647_v62, %v1647_v62 }
 0x184   : > { %v778_v16 = vmul.f32 0.03125, %v759_v40 }
 0x185   : > { %v803_v35 = vsel %vm750_vm5, %v793_v23, 0.0 }
 0x186   : > { %v1653_v37 = vsub.f32 %v1568_v44, %v778_v16  ;;  %804 = vadd.xlane.f32.xlu1 %v803_v35 }
 0x188   : > { %v794_v58 = vmul.f32 %v1653_v37, %v1653_v37 }
 0x18a   : > { %v762_v26 = vpop.xlane.xlu1 %761  ;;  %v806_v28 = vsel %vm750_vm5, %v794_v58, 0.0 }
 0x18b   : > { %v779_v29 = vmul.f32 0.03125, %v762_v26  ;;  %807 = vadd.xlane.f32.xlu0 %v806_v28 }
 0x18d   : > { %v1659_v9 = vsub.f32 %v1595_v22, %v779_v29 }
 0x18f   : > { %v795_v31 = vmul.f32 %v1659_v9, %v1659_v9 }
 0x190   : > { %v765_v36 = vpop.xlane.xlu0 %764 }
 0x191   : > { %v780_v25 = vmul.f32 0.03125, %v765_v36  ;;  %v809_v44 = vsel %vm750_vm5, %v795_v31, 0.0 }
 0x192   : > { %810 = vadd.xlane.f32.xlu1 %v809_v44 }
 0x193   : > { %v1664_v38 = vsub.f32 %v746_v50, %v780_v25 }
 0x195   : > { %v768_v39 = vpop.xlane.xlu1 %767  ;;  %v796_v41 = vmul.f32 %v1664_v38, %v1664_v38 }
 0x196   : > { %v781_v42 = vmul.f32 0.03125, %v768_v39 }
 0x197   : > { %v812_v24 = vsel %vm750_vm5, %v796_v41, 0.0 }
 0x198   : > { %v1669_v46 = vsub.f32 %v747_v2, %v781_v42  ;;  %813 = vadd.xlane.f32.xlu0 %v812_v24 }
 0x19a   : > { %v797_v22 = vmul.f32 %v1669_v46, %v1669_v46 }
 0x19b   : > { %v771_v45 = vpop.xlane.xlu0 %770 }
 0x19c   : > { %v782_v47 = vmul.f32 0.03125, %v771_v45  ;;  %v815_v48 = vsel %vm750_vm5, %v797_v22, 0.0 }
 0x19d   : > { %816 = vadd.xlane.f32.xlu1 %v815_v48 }
 0x19e   : > { %v1674_v49 = vsub.f32 %v748_v4, %v782_v47 }
 0x19f   : > { %v774_v32 = vpop.xlane.xlu1 %773 }
 0x1a0   : > { %v783_v50 = vmul.f32 0.03125, %v774_v32  ;;  %v798_v51 = vmul.f32 %v1674_v49, %v1674_v49 }
 0x1a2   : > { %v1678_v43 = vsub.f32 %v749_v10, %v783_v50  ;;  %v818_v52 = vsel %vm750_vm5, %v798_v51, 0.0 }
 0x1a3   : > { %819 = vadd.xlane.f32.xlu0 %v818_v52 }
 0x1a4   : > { %v799_v53 = vmul.f32 %v1678_v43, %v1678_v43 }
 0x1a6   : > { %v821_v12 = vsel %vm750_vm5, %v799_v53, 0.0 }
 0x1a7   : > { %822 = vadd.xlane.f32.xlu1 %v821_v12 }
 0x20a   : > { %v802_v54 = vpop.xlane.xlu0 %801 }
 0x20b   : > { %v824_v18 = vmul.f32 0.03125, %v802_v54 }
 0x20d   : > { %v832_v19 = vadd.f32 1e-05, %v824_v18 }
 0x20f   : > { %1226 = vrsqrt.f32 %v832_v19  ;;  %v805_v14 = vpop.xlane.xlu1 %804 }
 0x210   : > { %v825_v57 = vmul.f32 0.03125, %v805_v14 }
 0x212   : > { %v833_v59 = vadd.f32 1e-05, %v825_v57 }
 0x214   : > { %1228 = vrsqrt.f32 %v833_v59  ;;  %v808_v2 = vpop.xlane.xlu0 %807 }
 0x215   : > { %v826_v15 = vmul.f32 0.03125, %v808_v2 }
 0x217   : > { %v834_v61 = vadd.f32 1e-05, %v826_v15 }
 0x219   : > { %1230 = vrsqrt.f32 %v834_v61 }
 0x21b   : > { %v811_v1 = vpop.xlane.xlu1 %810 }
 0x21c   : > { %v1227_v63 = vpop.eup %1226  ;;  %v827_v27 = vmul.f32 0.03125, %v811_v1 }
 0x21d   : > { %v848_v3 = vmul.f32 %v1227_v63, %v1641_v33 }
 0x21e   : > { %v835_v5 = vadd.f32 1e-05, %v827_v27 }
 0x21f   : > { %v863_v4 = vmul.f32 %v1693_v0, %v848_v3 }
 0x220   : > { %1232 = vrsqrt.f32 %v835_v5 }
 0x221   : > { %v878_v6 = vadd.f32 %v1699_v60, %v863_v4  ;;  %v1229_v34 = vpop.eup %1228  ;;  %v814_v7 = vpop.xlane.xlu0 %813 }
 0x222   : > { %v849_v10 = vmul.f32 %v1229_v34, %v1647_v62  ;;  %v828_v11 = vmul.f32 0.03125, %v814_v7 }
 0x223   : > { %v894_v13 = vmul.f32 0.70710677, %v878_v6  ;;  %v886_v50 = vmul.f32 0.5, %v878_v6 }
 0x224   : > { %v836_v17 = vadd.f32 1e-05, %v828_v11  ;;  %v864_v33 = vmul.f32 %v1693_v0, %v849_v10 }
 0x225   : > { %1234 = verf.f32 %v894_v13 }
 0x226   : > { %v1231_v30 = vpop.eup %1230  ;;  %1236 = vrsqrt.f32 %v836_v17  ;;  %v817_v8 = vpop.xlane.xlu1 %816  ;;  %v879_v20 = vadd.f32 %v1699_v60, %v864_v33 }
 0x227   : > { %v850_v21 = vmul.f32 %v1231_v30, %v1653_v37  ;;  %v829_v40 = vmul.f32 0.03125, %v817_v8 }
 0x228   : > { %v895_v23 = vmul.f32 0.70710677, %v879_v20  ;;  %v887_v51 = vmul.f32 0.5, %v879_v20 }
 0x229   : > { %v865_v16 = vmul.f32 %v1693_v0, %v850_v21  ;;  %v837_v35 = vadd.f32 1e-05, %v829_v40 }
 0x22a   : > { %1238 = verf.f32 %v895_v23 }
 0x22b   : > { %1240 = vrsqrt.f32 %v837_v35  ;;  %v880_v62 = vadd.f32 %v1699_v60, %v865_v16 }
 0x22c   : > { %v820_v58 = vpop.xlane.xlu0 %819 }
 0x22d   : > { %v1233_v26 = vpop.eup %1232  ;;  %v830_v28 = vmul.f32 0.03125, %v820_v58  ;;  %v896_v31 = vmul.f32 0.70710677, %v880_v62  ;;  %v888_v27 = vmul.f32 0.5, %v880_v62 }
 0x22e   : > { %v851_v29 = vmul.f32 %v1233_v26, %v1659_v9 }
 0x22f   : > { %v838_v36 = vadd.f32 1e-05, %v830_v28 }
 0x230   : > { %v866_v25 = vmul.f32 %v1693_v0, %v851_v29  ;;  %v823_v44 = vpop.xlane.xlu1 %822 }
 0x231   : > { %1242 = vrsqrt.f32 %v838_v36  ;;  %v831_v37 = vmul.f32 0.03125, %v823_v44 }
 0x232   : > { %v1235_v39 = vpop.eup %1234  ;;  %v881_v41 = vadd.f32 %v1699_v60, %v866_v25  ;;  %1244 = verf.f32 %v896_v31  ;;  %v1139_v31 = vld [vmem:[%s1760_s8] ss:$0 sm:$0xff] }
 0x233   : > { %v1237_v42 = vpop.eup %1236  ;;  %v839_v24 = vadd.f32 1e-05, %v831_v37  ;;  %v910_v47 = vadd.f32 1.0, %v1235_v39 }
 0x234   : > { %v852_v22 = vmul.f32 %v1237_v42, %v1664_v38  ;;  %v897_v45 = vmul.f32 0.70710677, %v881_v41  ;;  %v889_v5 = vmul.f32 0.5, %v881_v41 }
 0x235   : > { %1246 = vrsqrt.f32 %v839_v24  ;;  %v918_v55 = vmul.f32 %v910_v47, %v886_v50 }
 0x236   : > { %1248 = verf.f32 %v897_v45  ;;  %v867_v9 = vmul.f32 %v1693_v0, %v852_v22 }
 0x237   : > { %v1239_v48 = vpop.eup %1238 }
 0x238   : > { %v1241_v32 = vpop.eup %1240  ;;  %v911_v52 = vadd.f32 1.0, %v1239_v48  ;;  %v882_v53 = vadd.f32 %v1699_v60, %v867_v9 }
 0x239   : > { %v853_v12 = vmul.f32 %v1241_v32, %v1669_v46 }
 0x23a   : > { %v919_v56 = vmul.f32 %v911_v52, %v887_v51  ;;  %v898_v54 = vmul.f32 0.70710677, %v882_v53  ;;  %v890_v30 = vmul.f32 0.5, %v882_v53 }
 0x23b   : > { %v868_v38 = vmul.f32 %v1693_v0, %v853_v12 }
 0x23c   : > { %v926_v18 = vpack.c.bf16 %v919_v56, %v918_v55  ;;  %1250 = verf.f32 %v898_v54 }
 0x23d   : > { %v883_v19 = vadd.f32 %v1699_v60, %v868_v38 }
 0x23e   : > { %v1243_v14 = vpop.eup %1242  ;;  %1187 = vmatprep.mubr.msk.bf16.mxu1 %vm750_vm5, %v926_v18 }
 0x23f   : > { %v1245_v57 = vpop.eup %1244  ;;  %v854_v59 = vmul.f32 %v1243_v14, %v1674_v49  ;;  %v899_v2 = vmul.f32 0.70710677, %v883_v19  ;;  %v891_v8 = vmul.f32 0.5, %v883_v19 }
 0x240   : > { %v912_v61 = vadd.f32 1.0, %v1245_v57 }
 0x241   : > { %1252 = verf.f32 %v899_v2  ;;  %v869_v15 = vmul.f32 %v1693_v0, %v854_v59 }
 0x242   : > { %v1247_v46 = vpop.eup %1246  ;;  %v920_v7 = vmul.f32 %v912_v61, %v888_v27 }
 0x243   : > { %v1249_v63 = vpop.eup %1248  ;;  %v855_v1 = vmul.f32 %v1247_v46, %v1678_v43  ;;  %v884_v3 = vadd.f32 %v1699_v60, %v869_v15 }
 0x244   : > { %v913_v4 = vadd.f32 1.0, %v1249_v63 }
 0x245   : > { %v870_v6 = vmul.f32 %v1693_v0, %v855_v1  ;;  %v900_v34 = vmul.f32 0.70710677, %v884_v3  ;;  %v892_v35 = vmul.f32 0.5, %v884_v3 }
 0x246   : > { %v921_v10 = vmul.f32 %v913_v4, %v889_v5 }
 0x247   : > { %v885_v49 = vadd.f32 %v1699_v60, %v870_v6  ;;  %1254 = verf.f32 %v900_v34 }
 0x248   : > { %v927_v11 = vpack.c.bf16 %v921_v10, %v920_v7 }
 0x249   : > { %v901_v13 = vmul.f32 0.70710677, %v885_v49  ;;  %v1251_v17 = vpop.eup %1250  ;;  %v893_v62 = vmul.f32 0.5, %v885_v49 }
 0x24a   : > { %1188 = vmatmul.mubr.msk.bf16.vlgmr.msra.gmra.mxu1 %vm750_vm5, %v927_v11  ;;  %v914_v43 = vadd.f32 1.0, %v1251_v17 }
 0x24b   : > { %1256 = verf.f32 %v901_v13 }
 0x24c   : > { %v922_v21 = vmul.f32 %v914_v43, %v890_v30 }
 0x24e   : > { %v1253_v33 = vpop.eup %1252 }
 0x24f   : > { %v915_v20 = vadd.f32 1.0, %v1253_v33 }
 0x251   : > { %v923_v0 = vmul.f32 %v915_v20, %v891_v8 }
 0x253   : > { %v928_v40 = vpack.c.bf16 %v923_v0, %v922_v21 }
 0x254   : > { %v1255_v23 = vpop.eup %1254 }
 0x255   : > { %1191 = vmatprep.mubr.msk.bf16.mxu1 %vm750_vm5, %v928_v40  ;;  %v916_v60 = vadd.f32 1.0, %v1255_v23 }
 0x257   : > { %v924_v26 = vmul.f32 %v916_v60, %v892_v35 }
 0x258   : > { %v1257_v16 = vpop.eup %1256 }
 0x259   : > { %v917_v58 = vadd.f32 1.0, %v1257_v16 }
 0x25b   : > { %v925_v28 = vmul.f32 %v917_v58, %v893_v62 }
 0x25d   : > { %v929_v29 = vpack.c.bf16 %v925_v28, %v924_v26 }
 0x25f   : > { %1192 = vmatmul.mubr.msk.bf16.gmra.mxu1 %vm750_vm5, %v929_v29 }
 0x30a   : > { %v1189_v36 = vpop.f32.mrf.mxu1 }
 0x30b   : > { %v1008_v25 = vadd.f32 %v1189_v36, %v1139_v31 }
 0x30c   : > { %v999_v44 = vpop.f32.mrf.mxu1 }
 0x30d   : > { %1032 = vst.msk [vmem:[%s354_s23 + $0x10] sm:$0xff] %vm382_vm2, %v1008_v25  ;;  %v1000_v37 = vadd.f32 %v1139_v31, %v999_v44 }
 0x30e   : > { %v1190_v39 = vpop.f32.mrf.mxu1 }
 0x30f   : > { %1030 = vst.msk [vmem:[%s354_s23] sm:$0xff] %vm382_vm2, %v1000_v37  ;;  %v1011_v41 = vadd.f32 %v1190_v39, %v1139_v31 }
 0x310   : > { %v1002_v42 = vpop.f32.mrf.mxu1 }
 0x311   : > { %1033 = vst.msk [vmem:[%s354_s23 + $0x18] sm:$0xff] %vm382_vm2, %v1011_v41  ;;  %v1003_v24 = vadd.f32 %v1139_v31, %v1002_v42 }
 0x313   : > { %1031 = vst.msk [vmem:[%s354_s23 + $0x8] sm:$0xff] %vm382_vm2, %v1003_v24 }
 0x31f   : > { %v1193_v22 = vpop.f32.mrf.mxu1 }
 0x320   : > { %v1024_v45 = vadd.f32 %v1193_v22, %v1139_v31 }
 0x321   : > { %v1015_v47 = vpop.f32.mrf.mxu1 }
 0x322   : > { %1036 = vst.msk [vmem:[%s354_s23 + $0x30] sm:$0xff] %vm382_vm2, %v1024_v45  ;;  %v1016_v9 = vadd.f32 %v1139_v31, %v1015_v47 }
 0x323   : > { %v1194_v48 = vpop.f32.mrf.mxu1 }
 0x324   : > { %1034 = vst.msk [vmem:[%s354_s23 + $0x20] sm:$0xff] %vm382_vm2, %v1016_v9  ;;  %v1027_v32 = vadd.f32 %v1194_v48, %v1139_v31 }
 0x325   : > { %v1018_v50 = vpop.f32.mrf.mxu1 }
 0x326   : > { %1037 = vst.msk [vmem:[%s354_s23 + $0x38] sm:$0xff] %vm382_vm2, %v1027_v32  ;;  %v1019_v51 = vadd.f32 %v1139_v31, %v1018_v50 }
 0x328   : > { %1035 = vst.msk [vmem:[%s354_s23 + $0x28] sm:$0xff] %vm382_vm2, %v1019_v51 }
 0x329 PF: > { %s19_s11 = sadd.s32 1, %s1280_s11   ;;  %s1762_s30 = smov %s1276_s10 }
 0x32a   : > { %p16_p5 = scmp.ge.s32.totalorder %s19_s11, 4   ;;  %s1763_s10 = smov %s1765_s12 }
 0x32c   :  { %18 = sbr.rel (!%p16_p5) target bundleno = 2 (0x2), region = 87 }

</bundles_post_ra>
